<compile_context>
chip_gen: v7x
topology: tpu7x:2x2x1
jax: 0.10.0
libtpu: 0.0.40
codegen_flags: <defaults>
</compile_context>

<pallas_src>
import functools

import jax
import jax.numpy as jnp
import numpy as np
from jax import lax
from jax.experimental import pallas as pl
from jax.experimental.pallas import tpu as pltpu


def _round_up(n, m):
    return ((n + m - 1) // m) * m


# ----------------------------------------------------------------------------
# Fused _ResCNN kernel: all ResBlocks in a single gridless Pallas invocation.
# ----------------------------------------------------------------------------
def _make_rescnn_kernel(*, meta, batch, length, kernel_size, dilation,
                        cmax, nlpad, n_wmats, has_aux):
    """meta: tuple of (c_in, c_out, has_identity_conv) per block (static)."""
    pad = (kernel_size // 2) * dilation
    offsets = [k * dilation - pad for k in range(kernel_size)]
    num_blocks = len(meta)
    bias_off = n_wmats * cmax                      # lane offset of bias columns
    c_in0 = meta[0][0]                             # input channels of block 0
    c_aux = meta[0][1]                             # channels of aux (= inner)
    c_latent = meta[num_blocks - 2][1]             # channels of self.latent
    c_out = meta[-1][1]

    def kernel(*refs):
        if has_aux:
            x_ref, aux_ref, slab_ref, latent_ref, out_ref, fold_ref = refs
        else:
            x_ref, slab_ref, latent_ref, out_ref, fold_ref = refs
            aux_ref = None

        slab = slab_ref[...]                       # (cmax, n_wmats*cmax + n_bias)

        def get_w(j):                              # j-th (cmax, cmax) matrix
            return slab[:, j * cmax:(j + 1) * cmax]

        def get_b(j):                              # j-th bias column (cmax, 1)
            return slab[:, bias_off + j:bias_off + j + 1]

        # Boundary masks for the shifted taps: lane p may read lane p+d only
        # when it stays inside the same length-`length` series.  This realises
        # the conv's 'same' zero padding and prevents leakage between the batch
        # elements folded into the lane axis (and from the zeroed pad lanes).
        lane = lax.broadcasted_iota(jnp.int32, (1, nlpad), 1)
        pos = lane % length
        masks = {d: ((pos + d >= 0) & (pos + d < length)).astype(jnp.float32)
                 for d in offsets if d != 0}

        def tap(h, d):
            if d == 0:
                return h
            # roll(h, -d)[:, p] == h[:, (p + d) % nlpad]; mask kills wrap /
            # cross-series reads.  XLU + VPU slots, bit-exact f32.
            return pltpu.roll(h, (-d) % nlpad, axis=1) * masks[d]

        def conv_same(h, wj, bj):
            # Accumulator initialised from the centre tap + bias (no zero-init).
            ks = sorted(range(kernel_size), key=lambda k: abs(offsets[k]))
            k0 = ks[0]
            acc = jnp.dot(get_w(wj + k0), tap(h, offsets[k0]),
                          preferred_element_type=jnp.float32) + get_b(bj)
            for k in ks[1:]:
                acc = acc + jnp.dot(get_w(wj + k), tap(h, offsets[k]),
                                    preferred_element_type=jnp.float32)
            return acc

        # ---- fold (N, C, L) -> lane-dense (cmax, nlpad) layout in VMEM ----
        fold_ref[...] = jnp.zeros((cmax, nlpad), jnp.float32)
        for b in range(batch):
            fold_ref[0:c_in0, b * length:(b + 1) * length] = x_ref[b]
        h = fold_ref[...]

        if has_aux:
            fold_ref[...] = jnp.zeros((cmax, nlpad), jnp.float32)
            for b in range(batch):
                fold_ref[0:c_aux, b * length:(b + 1) * length] = aux_ref[b]
            auxv = fold_ref[...]

        # ---- the ResBlocks (fully unrolled; everything stays in vregs) ----
        wj = 0   # running index into the packed weight matrices
        bj = 0   # running index into the packed bias columns
        for bi, (_ci, _co, has_id) in enumerate(meta):
            # residual link: conv -> ReLU -> conv   (LayerNorms are Identity)
            h1 = jnp.maximum(conv_same(h, wj, bj), 0.0)
            wj += kernel_size; bj += 1
            residual = conv_same(h1, wj, bj)
            wj += kernel_size; bj += 1

            # identity link: 1x1 conv when channel count changes, else passthrough
            if has_id:
                identity = jnp.dot(get_w(wj), h,
                                   preferred_element_type=jnp.float32) + get_b(bj)
                wj += 1; bj += 1
            else:
                identity = h

            # after-addition activation (ReLU)
            h = jnp.maximum(identity + residual, 0.0)

            if bi == 0 and has_aux:
                h = h + auxv                       # auxiliary_input add
            if bi == num_blocks - 2:
                # _ResCNN.latent — unfold back to (N, C, L)
                for b in range(batch):
                    latent_ref[b] = h[0:c_latent, b * length:(b + 1) * length]

        # final output — unfold back to (N, C, L)
        for b in range(batch):
            out_ref[b] = h[0:c_out, b * length:(b + 1) * length]

    return kernel


# ----------------------------------------------------------------------------
# Forward wrapper: ONE gridless pallas_call, no wrapper-side layout ops.
# ----------------------------------------------------------------------------
def _rescnn_forward(x, aux, slab, *, meta, kernel_size, dilation, cmax, n_wmats):
    batch, _c_in, length = x.shape
    nlpad = _round_up(max(batch * length, 128), 128)
    num_blocks = len(meta)
    c_latent = meta[num_blocks - 2][1]
    c_out = meta[-1][1]
    has_aux = aux is not None

    if x.dtype != jnp.float32:
        x = x.astype(jnp.float32)
    if has_aux and aux.dtype != jnp.float32:
        aux = aux.astype(jnp.float32)

    kernel = _make_rescnn_kernel(meta=meta, batch=batch, length=length,
                                 kernel_size=kernel_size, dilation=dilation,
                                 cmax=cmax, nlpad=nlpad, n_wmats=n_wmats,
                                 has_aux=has_aux)

    args = (x, aux, slab) if has_aux else (x, slab)
    # Gridless pallas_call: every operand is a whole-array VMEM block (default
    # BlockSpecs) — no per-step pipeline overhead, all intermediates on-chip.
    # Total VMEM footprint is a few tens of KiB (fits v5e/v6e/v7x trivially).
    latent, out = pl.pallas_call(
        kernel,
        out_shape=(jax.ShapeDtypeStruct((batch, c_latent, length), jnp.float32),
                   jax.ShapeDtypeStruct((batch, c_out, length), jnp.float32)),
        scratch_shapes=[pltpu.VMEM((cmax, nlpad), jnp.float32)],
    )(*args)
    return latent, out


# ----------------------------------------------------------------------------
# Parameter init (deterministic, mirrors the PyTorch module's shapes).
# ----------------------------------------------------------------------------
def init_resblock_params(key, c_in, c_out, kernel_size):
    k1, k2, k3, k4, k5, k6 = jax.random.split(key, 6)
    s1 = 1.0 / np.sqrt(c_in * kernel_size)
    s2 = 1.0 / np.sqrt(c_out * kernel_size)
    w1 = jax.random.normal(k1, (c_out, c_in, kernel_size), jnp.float32) * s1
    b1 = jax.random.normal(k2, (c_out,), jnp.float32) * s1
    w2 = jax.random.normal(k3, (c_out, c_out, kernel_size), jnp.float32) * s2
    b2 = jax.random.normal(k4, (c_out,), jnp.float32) * s2
    if c_in != c_out:
        wid = jax.random.normal(k5, (c_out, c_in), jnp.float32) / np.sqrt(c_in)
        bid = jax.random.normal(k6, (c_out,), jnp.float32) / np.sqrt(c_in)
    else:
        wid, bid = None, None          # nn.Identity() identity link
    return (w1, b1, w2, b2, wid, bid)


def pack_params(block_params, meta, cmax, kernel_size):
    """Pack every conv tap matrix (zero-padded to (cmax, cmax)) and every conv
    bias column into one lane-dense (cmax, n_wmats*cmax + n_bias) slab so the
    fused kernel receives a single parameter operand."""
    def pad_mat(w):
        w = np.asarray(w, np.float32)
        out = np.zeros((cmax, cmax), np.float32)
        out[:w.shape[0], :w.shape[1]] = w
        return out

    def pad_vec(b):
        b = np.asarray(b, np.float32)
        out = np.zeros((cmax,), np.float32)
        out[:b.shape[0]] = b
        return out

    w_cols, b_cols = [], []
    for (w1, b1, w2, b2, wid, bid), (_ci, _co, has_id) in zip(block_params, meta):
        w1 = np.asarray(w1); w2 = np.asarray(w2)
        for k in range(kernel_size):
            w_cols.append(pad_mat(w1[:, :, k]))
        b_cols.append(pad_vec(b1))
        for k in range(kernel_size):
            w_cols.append(pad_mat(w2[:, :, k]))
        b_cols.append(pad_vec(b2))
        if has_id:
            w_cols.append(pad_mat(wid))
            b_cols.append(pad_vec(bid))
    n_wmats = len(w_cols)
    slab = np.concatenate(w_cols + [np.stack(b_cols, axis=1)], axis=1)
    return jnp.asarray(slab), n_wmats


# ----------------------------------------------------------------------------
# _ResCNN: input block -> latent blocks -> output block (single fused kernel).
# ----------------------------------------------------------------------------
class ResCNN:
    def __init__(self, key, *, num_resblock=3, kernel_size=3, dilation=1,
                 c_in=4, c_inner=8, c_out=4):
        channel_pairs = ([(c_in, c_inner)]
                         + [(c_inner, c_inner)] * (num_resblock - 2)
                         + [(c_inner, c_out)])
        self.meta = tuple((ci, co, ci != co) for ci, co in channel_pairs)
        self.kernel_size = kernel_size
        self.dilation = dilation

        keys = jax.random.split(key, len(channel_pairs))
        self.block_params = [init_resblock_params(k, ci, co, kernel_size)
                             for k, (ci, co) in zip(keys, channel_pairs)]
        self.cmax = _round_up(max(max(ci, co) for ci, co in channel_pairs), 8)
        self.slab, self.n_wmats = pack_params(self.block_params, self.meta,
                                              self.cmax, kernel_size)

        self._fwd = jax.jit(functools.partial(
            _rescnn_forward, meta=self.meta, kernel_size=kernel_size,
            dilation=dilation, cmax=self.cmax, n_wmats=self.n_wmats))
        self.latent = None

    def __call__(self, x, auxiliary_input=None):
        latent, out = self._fwd(x, auxiliary_input, self.slab)
        self.latent = latent
        return out


# ----------------------------------------------------------------------------
# Pure-JAX reference (lax.conv) for correctness checks.
# ----------------------------------------------------------------------------
def _ref_conv1d(x, w, b, pad, dil):
    y = lax.conv_general_dilated(x, w, window_strides=(1,),
                                 padding=[(pad, pad)], rhs_dilation=(dil,),
                                 dimension_numbers=('NCH', 'OIH', 'NCH'))
    return y + b[None, :, None]


def _ref_resblock(x, params, kernel_size, dilation):
    w1, b1, w2, b2, wid, bid = params
    pad = (kernel_size // 2) * dilation
    h1 = jnp.maximum(_ref_conv1d(x, w1, b1, pad, dilation), 0.0)
    residual = _ref_conv1d(h1, w2, b2, pad, dilation)
    identity = x if wid is None else _ref_conv1d(x, wid[:, :, None], bid, 0, 1)
    return jnp.maximum(identity + residual, 0.0)


def _ref_rescnn(x, block_params, kernel_size, dilation, aux=None):
    h = x
    latent = None
    nb = len(block_params)
    for idx, p in enumerate(block_params):
        h = _ref_resblock(h, p, kernel_size, dilation)
        if idx == 0 and aux is not None:
            h = h + aux
        if idx == nb - 2:
            latent = h
    return latent, h


if __name__ == "__main__":
    key = jax.random.PRNGKey(0)
    k_params, k_x, k_aux = jax.random.split(key, 3)

    N, C_IN, C_INNER, C_OUT, L = 2, 4, 8, 4, 16      # dim_series = 16
    model = ResCNN(k_params, num_resblock=3, kernel_size=3,
                   c_in=C_IN, c_inner=C_INNER, c_out=C_OUT)

    x = jax.random.normal(k_x, (N, C_IN, L), jnp.float32)

    # ---- auxiliary_input = None path ----
    out = jax.block_until_ready(model(x))
    ref_latent, ref_out = _ref_rescnn(x, model.block_params,
                                      model.kernel_size, model.dilation)
    np.testing.assert_allclose(np.asarray(out), np.asarray(ref_out),
                               rtol=1e-3, atol=1e-3)
    np.testing.assert_allclose(np.asarray(model.latent), np.asarray(ref_latent),
                               rtol=1e-3, atol=1e-3)
    assert out.shape == (N, C_OUT, L)

    # ---- auxiliary_input path (validates the aux-add placement) ----
    aux = jax.random.normal(k_aux, (N, C_INNER, L), jnp.float32)
    out_aux = jax.block_until_ready(model(x, aux))
    ref_latent_a, ref_out_a = _ref_rescnn(x, model.block_params,
                                          model.kernel_size, model.dilation,
                                          aux=aux)
    np.testing.assert_allclose(np.asarray(out_aux), np.asarray(ref_out_a),
                               rtol=1e-3, atol=1e-3)
    np.testing.assert_allclose(np.asarray(model.latent), np.asarray(ref_latent_a),
                               rtol=1e-3, atol=1e-3)

    print("KERNEL_OK")
</pallas_src>

<mosaic_0001>
module attributes {stable_mosaic.version = 11 : i64} {
  func.func @kernel(%arg0: memref<2x4x16xf32, #tpu.memory_space<vmem>>, %arg1: memref<8x168xf32, #tpu.memory_space<vmem>>, %arg2: memref<2x8x16xf32, #tpu.memory_space<vmem>>, %arg3: memref<2x4x16xf32, #tpu.memory_space<vmem>>, %arg4: memref<8x128xf32, #tpu.memory_space<vmem>>) attributes {dimension_semantics = [], scalar_prefetch = 0 : i64, scratch_operands = 1 : i64, tpu.core_type = #tpu.core_type<tc>} {
    %c0 = arith.constant 0 : index
    %c0_0 = arith.constant 0 : index
    %0 = vector.load %arg1[%c0, %c0_0] : memref<8x168xf32, #tpu.memory_space<vmem>>, vector<8x168xf32>
    %1 = tpu.iota {dimensions = array<i32: 1>} : vector<1x128xi32>
    %c16_i32 = arith.constant 16 : i32
    %c0_i32 = arith.constant 0 : i32
    %2 = arith.cmpi eq, %c16_i32, %c0_i32 : i32
    %c1_i32 = arith.constant 1 : i32
    %3 = arith.select %2, %c1_i32, %c16_i32 : i32
    %4 = vector.broadcast %3 : i32 to vector<1x128xi32>
    %5 = arith.remsi %1, %4 : vector<1x128xi32>
    %c0_i32_1 = arith.constant 0 : i32
    %6 = vector.broadcast %c0_i32_1 : i32 to vector<1x128xi32>
    %7 = arith.cmpi ne, %5, %6 : vector<1x128xi32>
    %c0_i32_2 = arith.constant 0 : i32
    %8 = vector.broadcast %c0_i32_2 : i32 to vector<1x128xi32>
    %9 = arith.cmpi slt, %5, %8 : vector<1x128xi32>
    %c0_i32_3 = arith.constant 0 : i32
    %10 = arith.cmpi slt, %3, %c0_i32_3 : i32
    %11 = vector.broadcast %10 : i1 to vector<1x128xi1>
    %12 = vector.broadcast %11 : vector<1x128xi1> to vector<1x128xi1>
    %13 = arith.xori %9, %12 : vector<1x128xi1>
    %14 = arith.andi %13, %7 : vector<1x128xi1>
    %15 = vector.broadcast %3 : i32 to vector<1x128xi32>
    %16 = arith.addi %5, %15 : vector<1x128xi32>
    %17 = arith.select %14, %16, %5 : vector<1x128xi1>, vector<1x128xi32>
    %c-1_i32 = arith.constant -1 : i32
    %18 = vector.broadcast %c-1_i32 : i32 to vector<1x128xi32>
    %19 = arith.addi %17, %18 : vector<1x128xi32>
    %c0_i32_4 = arith.constant 0 : i32
    %20 = vector.broadcast %c0_i32_4 : i32 to vector<1x128xi32>
    %21 = arith.cmpi sge, %19, %20 : vector<1x128xi32>
    %c-1_i32_5 = arith.constant -1 : i32
    %22 = vector.broadcast %c-1_i32_5 : i32 to vector<1x128xi32>
    %23 = arith.addi %17, %22 : vector<1x128xi32>
    %c16_i32_6 = arith.constant 16 : i32
    %24 = vector.broadcast %c16_i32_6 : i32 to vector<1x128xi32>
    %25 = arith.cmpi slt, %23, %24 : vector<1x128xi32>
    %26 = arith.andi %21, %25 : vector<1x128xi1>
    %27 = arith.extui %26 : vector<1x128xi1> to vector<1x128xi32>
    %28 = arith.sitofp %27 : vector<1x128xi32> to vector<1x128xf32>
    %c1_i32_7 = arith.constant 1 : i32
    %29 = vector.broadcast %c1_i32_7 : i32 to vector<1x128xi32>
    %30 = arith.addi %17, %29 : vector<1x128xi32>
    %c0_i32_8 = arith.constant 0 : i32
    %31 = vector.broadcast %c0_i32_8 : i32 to vector<1x128xi32>
    %32 = arith.cmpi sge, %30, %31 : vector<1x128xi32>
    %c1_i32_9 = arith.constant 1 : i32
    %33 = vector.broadcast %c1_i32_9 : i32 to vector<1x128xi32>
    %34 = arith.addi %17, %33 : vector<1x128xi32>
    %c16_i32_10 = arith.constant 16 : i32
    %35 = vector.broadcast %c16_i32_10 : i32 to vector<1x128xi32>
    %36 = arith.cmpi slt, %34, %35 : vector<1x128xi32>
    %37 = arith.andi %32, %36 : vector<1x128xi1>
    %38 = arith.extui %37 : vector<1x128xi1> to vector<1x128xi32>
    %39 = arith.sitofp %38 : vector<1x128xi32> to vector<1x128xf32>
    %cst = arith.constant 0.000000e+00 : f32
    %40 = vector.broadcast %cst : f32 to vector<8x128xf32>
    %c0_11 = arith.constant 0 : index
    %c0_12 = arith.constant 0 : index
    %41 = vector.load %arg4[%c0_11, %c0_12] : memref<8x128xf32, #tpu.memory_space<vmem>>, vector<8x128xf32>
    tpu.vector_store %arg4[%c0_11, %c0_12], %40 {strides = array<i32>} : memref<8x128xf32, #tpu.memory_space<vmem>>, vector<8x128xf32>,
    %c0_13 = arith.constant 0 : index
    %c0_14 = arith.constant 0 : index
    %c0_15 = arith.constant 0 : index
    %42 = vector.load %arg0[%c0_13, %c0_14, %c0_15] : memref<2x4x16xf32, #tpu.memory_space<vmem>>, vector<1x4x16xf32>
    %43 = vector.shape_cast %42 : vector<1x4x16xf32> to vector<4x16xf32>
    %c0_16 = arith.constant 0 : index
    %c0_17 = arith.constant 0 : index
    %44 = vector.load %arg4[%c0_16, %c0_17] : memref<8x128xf32, #tpu.memory_space<vmem>>, vector<4x16xf32>
    tpu.vector_store %arg4[%c0_16, %c0_17], %43 {strides = array<i32>} : memref<8x128xf32, #tpu.memory_space<vmem>>, vector<4x16xf32>,
    %c1 = arith.constant 1 : index
    %c0_18 = arith.constant 0 : index
    %c0_19 = arith.constant 0 : index
    %45 = vector.load %arg0[%c1, %c0_18, %c0_19] : memref<2x4x16xf32, #tpu.memory_space<vmem>>, vector<1x4x16xf32>
    %46 = vector.shape_cast %45 : vector<1x4x16xf32> to vector<4x16xf32>
    %c0_20 = arith.constant 0 : index
    %c16 = arith.constant 16 : index
    %47 = vector.load %arg4[%c0_20, %c16] : memref<8x128xf32, #tpu.memory_space<vmem>>, vector<4x16xf32>
    tpu.vector_store %arg4[%c0_20, %c16], %46 {strides = array<i32>} : memref<8x128xf32, #tpu.memory_space<vmem>>, vector<4x16xf32>,
    %c0_21 = arith.constant 0 : index
    %c0_22 = arith.constant 0 : index
    %48 = vector.load %arg4[%c0_21, %c0_22] : memref<8x128xf32, #tpu.memory_space<vmem>>, vector<8x128xf32>
    %49 = vector.extract_strided_slice %0 {offsets = [0, 8], sizes = [8, 8], strides = [1, 1]} : vector<8x168xf32> to vector<8x8xf32>
    %cst_23 = arith.constant dense<0.000000e+00> : vector<8x128xf32>
    %50 = tpu.matmul %49, %48, %cst_23 {dimension_numbers = #tpu.dot_dimension_numbers<[1], [0], [0], [1], [0, 0, 1, 1], [], []>} : vector<8x8xf32>, vector<8x128xf32>, vector<8x128xf32> -> vector<8x128xf32>
    %51 = vector.extract_strided_slice %0 {offsets = [0, 160], sizes = [8, 1], strides = [1, 1]} : vector<8x168xf32> to vector<8x1xf32>
    %52 = vector.broadcast %51 : vector<8x1xf32> to vector<8x128xf32>
    %53 = arith.addf %50, %52 : vector<8x128xf32>
    %54 = vector.extract_strided_slice %0 {offsets = [0, 0], sizes = [8, 8], strides = [1, 1]} : vector<8x168xf32> to vector<8x8xf32>
    %c1_i32_24 = arith.constant 1 : i32
    %55 = tpu.dynamic_rotate %48 by %c1_i32_24 dim 1 : vector<8x128xf32>, i32 -> vector<8x128xf32>
    %56 = vector.broadcast %28 : vector<1x128xf32> to vector<8x128xf32>
    %57 = arith.mulf %55, %56 : vector<8x128xf32>
    %cst_25 = arith.constant dense<0.000000e+00> : vector<8x128xf32>
    %58 = tpu.matmul %54, %57, %cst_25 {dimension_numbers = #tpu.dot_dimension_numbers<[1], [0], [0], [1], [0, 0, 1, 1], [], []>} : vector<8x8xf32>, vector<8x128xf32>, vector<8x128xf32> -> vector<8x128xf32>
    %59 = arith.addf %53, %58 : vector<8x128xf32>
    %60 = vector.extract_strided_slice %0 {offsets = [0, 16], sizes = [8, 8], strides = [1, 1]} : vector<8x168xf32> to vector<8x8xf32>
    %c127_i32 = arith.constant 127 : i32
    %61 = tpu.dynamic_rotate %48 by %c127_i32 dim 1 : vector<8x128xf32>, i32 -> vector<8x128xf32>
    %62 = vector.broadcast %39 : vector<1x128xf32> to vector<8x128xf32>
    %63 = arith.mulf %61, %62 : vector<8x128xf32>
    %cst_26 = arith.constant dense<0.000000e+00> : vector<8x128xf32>
    %64 = tpu.matmul %60, %63, %cst_26 {dimension_numbers = #tpu.dot_dimension_numbers<[1], [0], [0], [1], [0, 0, 1, 1], [], []>} : vector<8x8xf32>, vector<8x128xf32>, vector<8x128xf32> -> vector<8x128xf32>
    %65 = arith.addf %59, %64 : vector<8x128xf32>
    %cst_27 = arith.constant 0.000000e+00 : f32
    %66 = vector.broadcast %cst_27 : f32 to vector<8x128xf32>
    %67 = arith.maximumf %65, %66 : vector<8x128xf32>
    %68 = vector.extract_strided_slice %0 {offsets = [0, 32], sizes = [8, 8], strides = [1, 1]} : vector<8x168xf32> to vector<8x8xf32>
    %cst_28 = arith.constant dense<0.000000e+00> : vector<8x128xf32>
    %69 = tpu.matmul %68, %67, %cst_28 {dimension_numbers = #tpu.dot_dimension_numbers<[1], [0], [0], [1], [0, 0, 1, 1], [], []>} : vector<8x8xf32>, vector<8x128xf32>, vector<8x128xf32> -> vector<8x128xf32>
    %70 = vector.extract_strided_slice %0 {offsets = [0, 161], sizes = [8, 1], strides = [1, 1]} : vector<8x168xf32> to vector<8x1xf32>
    %71 = vector.broadcast %70 : vector<8x1xf32> to vector<8x128xf32>
    %72 = arith.addf %69, %71 : vector<8x128xf32>
    %73 = vector.extract_strided_slice %0 {offsets = [0, 24], sizes = [8, 8], strides = [1, 1]} : vector<8x168xf32> to vector<8x8xf32>
    %c1_i32_29 = arith.constant 1 : i32
    %74 = tpu.dynamic_rotate %67 by %c1_i32_29 dim 1 : vector<8x128xf32>, i32 -> vector<8x128xf32>
    %75 = vector.broadcast %28 : vector<1x128xf32> to vector<8x128xf32>
    %76 = arith.mulf %74, %75 : vector<8x128xf32>
    %cst_30 = arith.constant dense<0.000000e+00> : vector<8x128xf32>
    %77 = tpu.matmul %73, %76, %cst_30 {dimension_numbers = #tpu.dot_dimension_numbers<[1], [0], [0], [1], [0, 0, 1, 1], [], []>} : vector<8x8xf32>, vector<8x128xf32>, vector<8x128xf32> -> vector<8x128xf32>
    %78 = arith.addf %72, %77 : vector<8x128xf32>
    %79 = vector.extract_strided_slice %0 {offsets = [0, 40], sizes = [8, 8], strides = [1, 1]} : vector<8x168xf32> to vector<8x8xf32>
    %c127_i32_31 = arith.constant 127 : i32
    %80 = tpu.dynamic_rotate %67 by %c127_i32_31 dim 1 : vector<8x128xf32>, i32 -> vector<8x128xf32>
    %81 = vector.broadcast %39 : vector<1x128xf32> to vector<8x128xf32>
    %82 = arith.mulf %80, %81 : vector<8x128xf32>
    %cst_32 = arith.constant dense<0.000000e+00> : vector<8x128xf32>
    %83 = tpu.matmul %79, %82, %cst_32 {dimension_numbers = #tpu.dot_dimension_numbers<[1], [0], [0], [1], [0, 0, 1, 1], [], []>} : vector<8x8xf32>, vector<8x128xf32>, vector<8x128xf32> -> vector<8x128xf32>
    %84 = arith.addf %78, %83 : vector<8x128xf32>
    %85 = vector.extract_strided_slice %0 {offsets = [0, 48], sizes = [8, 8], strides = [1, 1]} : vector<8x168xf32> to vector<8x8xf32>
    %cst_33 = arith.constant dense<0.000000e+00> : vector<8x128xf32>
    %86 = tpu.matmul %85, %48, %cst_33 {dimension_numbers = #tpu.dot_dimension_numbers<[1], [0], [0], [1], [0, 0, 1, 1], [], []>} : vector<8x8xf32>, vector<8x128xf32>, vector<8x128xf32> -> vector<8x128xf32>
    %87 = vector.extract_strided_slice %0 {offsets = [0, 162], sizes = [8, 1], strides = [1, 1]} : vector<8x168xf32> to vector<8x1xf32>
    %88 = vector.broadcast %87 : vector<8x1xf32> to vector<8x128xf32>
    %89 = arith.addf %86, %88 : vector<8x128xf32>
    %90 = arith.addf %89, %84 : vector<8x128xf32>
    %cst_34 = arith.constant 0.000000e+00 : f32
    %91 = vector.broadcast %cst_34 : f32 to vector<8x128xf32>
    %92 = arith.maximumf %90, %91 : vector<8x128xf32>
    %93 = vector.extract_strided_slice %0 {offsets = [0, 64], sizes = [8, 8], strides = [1, 1]} : vector<8x168xf32> to vector<8x8xf32>
    %cst_35 = arith.constant dense<0.000000e+00> : vector<8x128xf32>
    %94 = tpu.matmul %93, %92, %cst_35 {dimension_numbers = #tpu.dot_dimension_numbers<[1], [0], [0], [1], [0, 0, 1, 1], [], []>} : vector<8x8xf32>, vector<8x128xf32>, vector<8x128xf32> -> vector<8x128xf32>
    %95 = vector.extract_strided_slice %0 {offsets = [0, 163], sizes = [8, 1], strides = [1, 1]} : vector<8x168xf32> to vector<8x1xf32>
    %96 = vector.broadcast %95 : vector<8x1xf32> to vector<8x128xf32>
    %97 = arith.addf %94, %96 : vector<8x128xf32>
    %98 = vector.extract_strided_slice %0 {offsets = [0, 56], sizes = [8, 8], strides = [1, 1]} : vector<8x168xf32> to vector<8x8xf32>
    %c1_i32_36 = arith.constant 1 : i32
    %99 = tpu.dynamic_rotate %92 by %c1_i32_36 dim 1 : vector<8x128xf32>, i32 -> vector<8x128xf32>
    %100 = vector.broadcast %28 : vector<1x128xf32> to vector<8x128xf32>
    %101 = arith.mulf %99, %100 : vector<8x128xf32>
    %cst_37 = arith.constant dense<0.000000e+00> : vector<8x128xf32>
    %102 = tpu.matmul %98, %101, %cst_37 {dimension_numbers = #tpu.dot_dimension_numbers<[1], [0], [0], [1], [0, 0, 1, 1], [], []>} : vector<8x8xf32>, vector<8x128xf32>, vector<8x128xf32> -> vector<8x128xf32>
    %103 = arith.addf %97, %102 : vector<8x128xf32>
    %104 = vector.extract_strided_slice %0 {offsets = [0, 72], sizes = [8, 8], strides = [1, 1]} : vector<8x168xf32> to vector<8x8xf32>
    %c127_i32_38 = arith.constant 127 : i32
    %105 = tpu.dynamic_rotate %92 by %c127_i32_38 dim 1 : vector<8x128xf32>, i32 -> vector<8x128xf32>
    %106 = vector.broadcast %39 : vector<1x128xf32> to vector<8x128xf32>
    %107 = arith.mulf %105, %106 : vector<8x128xf32>
    %cst_39 = arith.constant dense<0.000000e+00> : vector<8x128xf32>
    %108 = tpu.matmul %104, %107, %cst_39 {dimension_numbers = #tpu.dot_dimension_numbers<[1], [0], [0], [1], [0, 0, 1, 1], [], []>} : vector<8x8xf32>, vector<8x128xf32>, vector<8x128xf32> -> vector<8x128xf32>
    %109 = arith.addf %103, %108 : vector<8x128xf32>
    %cst_40 = arith.constant 0.000000e+00 : f32
    %110 = vector.broadcast %cst_40 : f32 to vector<8x128xf32>
    %111 = arith.maximumf %109, %110 : vector<8x128xf32>
    %112 = vector.extract_strided_slice %0 {offsets = [0, 88], sizes = [8, 8], strides = [1, 1]} : vector<8x168xf32> to vector<8x8xf32>
    %cst_41 = arith.constant dense<0.000000e+00> : vector<8x128xf32>
    %113 = tpu.matmul %112, %111, %cst_41 {dimension_numbers = #tpu.dot_dimension_numbers<[1], [0], [0], [1], [0, 0, 1, 1], [], []>} : vector<8x8xf32>, vector<8x128xf32>, vector<8x128xf32> -> vector<8x128xf32>
    %114 = vector.extract_strided_slice %0 {offsets = [0, 164], sizes = [8, 1], strides = [1, 1]} : vector<8x168xf32> to vector<8x1xf32>
    %115 = vector.broadcast %114 : vector<8x1xf32> to vector<8x128xf32>
    %116 = arith.addf %113, %115 : vector<8x128xf32>
    %117 = vector.extract_strided_slice %0 {offsets = [0, 80], sizes = [8, 8], strides = [1, 1]} : vector<8x168xf32> to vector<8x8xf32>
    %c1_i32_42 = arith.constant 1 : i32
    %118 = tpu.dynamic_rotate %111 by %c1_i32_42 dim 1 : vector<8x128xf32>, i32 -> vector<8x128xf32>
    %119 = vector.broadcast %28 : vector<1x128xf32> to vector<8x128xf32>
    %120 = arith.mulf %118, %119 : vector<8x128xf32>
    %cst_43 = arith.constant dense<0.000000e+00> : vector<8x128xf32>
    %121 = tpu.matmul %117, %120, %cst_43 {dimension_numbers = #tpu.dot_dimension_numbers<[1], [0], [0], [1], [0, 0, 1, 1], [], []>} : vector<8x8xf32>, vector<8x128xf32>, vector<8x128xf32> -> vector<8x128xf32>
    %122 = arith.addf %116, %121 : vector<8x128xf32>
    %123 = vector.extract_strided_slice %0 {offsets = [0, 96], sizes = [8, 8], strides = [1, 1]} : vector<8x168xf32> to vector<8x8xf32>
    %c127_i32_44 = arith.constant 127 : i32
    %124 = tpu.dynamic_rotate %111 by %c127_i32_44 dim 1 : vector<8x128xf32>, i32 -> vector<8x128xf32>
    %125 = vector.broadcast %39 : vector<1x128xf32> to vector<8x128xf32>
    %126 = arith.mulf %124, %125 : vector<8x128xf32>
    %cst_45 = arith.constant dense<0.000000e+00> : vector<8x128xf32>
    %127 = tpu.matmul %123, %126, %cst_45 {dimension_numbers = #tpu.dot_dimension_numbers<[1], [0], [0], [1], [0, 0, 1, 1], [], []>} : vector<8x8xf32>, vector<8x128xf32>, vector<8x128xf32> -> vector<8x128xf32>
    %128 = arith.addf %122, %127 : vector<8x128xf32>
    %129 = arith.addf %92, %128 : vector<8x128xf32>
    %cst_46 = arith.constant 0.000000e+00 : f32
    %130 = vector.broadcast %cst_46 : f32 to vector<8x128xf32>
    %131 = arith.maximumf %129, %130 : vector<8x128xf32>
    %132 = vector.extract_strided_slice %131 {offsets = [0, 0], sizes = [8, 16], strides = [1, 1]} : vector<8x128xf32> to vector<8x16xf32>
    %c0_47 = arith.constant 0 : index
    %c0_48 = arith.constant 0 : index
    %c0_49 = arith.constant 0 : index
    %133 = vector.load %arg2[%c0_47, %c0_48, %c0_49] : memref<2x8x16xf32, #tpu.memory_space<vmem>>, vector<1x8x16xf32>
    %134 = vector.shape_cast %133 : vector<1x8x16xf32> to vector<8x16xf32>
    %135 = vector.shape_cast %132 : vector<8x16xf32> to vector<1x8x16xf32>
    tpu.vector_store %arg2[%c0_47, %c0_48, %c0_49], %135 {strides = array<i32>} : memref<2x8x16xf32, #tpu.memory_space<vmem>>, vector<1x8x16xf32>,
    %136 = vector.extract_strided_slice %131 {offsets = [0, 16], sizes = [8, 16], strides = [1, 1]} : vector<8x128xf32> to vector<8x16xf32>
    %c1_50 = arith.constant 1 : index
    %c0_51 = arith.constant 0 : index
    %c0_52 = arith.constant 0 : index
    %137 = vector.load %arg2[%c1_50, %c0_51, %c0_52] : memref<2x8x16xf32, #tpu.memory_space<vmem>>, vector<1x8x16xf32>
    %138 = vector.shape_cast %137 : vector<1x8x16xf32> to vector<8x16xf32>
    %139 = vector.shape_cast %136 : vector<8x16xf32> to vector<1x8x16xf32>
    tpu.vector_store %arg2[%c1_50, %c0_51, %c0_52], %139 {strides = array<i32>} : memref<2x8x16xf32, #tpu.memory_space<vmem>>, vector<1x8x16xf32>,
    %140 = vector.extract_strided_slice %0 {offsets = [0, 112], sizes = [8, 8], strides = [1, 1]} : vector<8x168xf32> to vector<8x8xf32>
    %cst_53 = arith.constant dense<0.000000e+00> : vector<8x128xf32>
    %141 = tpu.matmul %140, %131, %cst_53 {dimension_numbers = #tpu.dot_dimension_numbers<[1], [0], [0], [1], [0, 0, 1, 1], [], []>} : vector<8x8xf32>, vector<8x128xf32>, vector<8x128xf32> -> vector<8x128xf32>
    %142 = vector.extract_strided_slice %0 {offsets = [0, 165], sizes = [8, 1], strides = [1, 1]} : vector<8x168xf32> to vector<8x1xf32>
    %143 = vector.broadcast %142 : vector<8x1xf32> to vector<8x128xf32>
    %144 = arith.addf %141, %143 : vector<8x128xf32>
    %145 = vector.extract_strided_slice %0 {offsets = [0, 104], sizes = [8, 8], strides = [1, 1]} : vector<8x168xf32> to vector<8x8xf32>
    %c1_i32_54 = arith.constant 1 : i32
    %146 = tpu.dynamic_rotate %131 by %c1_i32_54 dim 1 : vector<8x128xf32>, i32 -> vector<8x128xf32>
    %147 = vector.broadcast %28 : vector<1x128xf32> to vector<8x128xf32>
    %148 = arith.mulf %146, %147 : vector<8x128xf32>
    %cst_55 = arith.constant dense<0.000000e+00> : vector<8x128xf32>
    %149 = tpu.matmul %145, %148, %cst_55 {dimension_numbers = #tpu.dot_dimension_numbers<[1], [0], [0], [1], [0, 0, 1, 1], [], []>} : vector<8x8xf32>, vector<8x128xf32>, vector<8x128xf32> -> vector<8x128xf32>
    %150 = arith.addf %144, %149 : vector<8x128xf32>
    %151 = vector.extract_strided_slice %0 {offsets = [0, 120], sizes = [8, 8], strides = [1, 1]} : vector<8x168xf32> to vector<8x8xf32>
    %c127_i32_56 = arith.constant 127 : i32
    %152 = tpu.dynamic_rotate %131 by %c127_i32_56 dim 1 : vector<8x128xf32>, i32 -> vector<8x128xf32>
    %153 = vector.broadcast %39 : vector<1x128xf32> to vector<8x128xf32>
    %154 = arith.mulf %152, %153 : vector<8x128xf32>
    %cst_57 = arith.constant dense<0.000000e+00> : vector<8x128xf32>
    %155 = tpu.matmul %151, %154, %cst_57 {dimension_numbers = #tpu.dot_dimension_numbers<[1], [0], [0], [1], [0, 0, 1, 1], [], []>} : vector<8x8xf32>, vector<8x128xf32>, vector<8x128xf32> -> vector<8x128xf32>
    %156 = arith.addf %150, %155 : vector<8x128xf32>
    %cst_58 = arith.constant 0.000000e+00 : f32
    %157 = vector.broadcast %cst_58 : f32 to vector<8x128xf32>
    %158 = arith.maximumf %156, %157 : vector<8x128xf32>
    %159 = vector.extract_strided_slice %0 {offsets = [0, 136], sizes = [8, 8], strides = [1, 1]} : vector<8x168xf32> to vector<8x8xf32>
    %cst_59 = arith.constant dense<0.000000e+00> : vector<8x128xf32>
    %160 = tpu.matmul %159, %158, %cst_59 {dimension_numbers = #tpu.dot_dimension_numbers<[1], [0], [0], [1], [0, 0, 1, 1], [], []>} : vector<8x8xf32>, vector<8x128xf32>, vector<8x128xf32> -> vector<8x128xf32>
    %161 = vector.extract_strided_slice %0 {offsets = [0, 166], sizes = [8, 1], strides = [1, 1]} : vector<8x168xf32> to vector<8x1xf32>
    %162 = vector.broadcast %161 : vector<8x1xf32> to vector<8x128xf32>
    %163 = arith.addf %160, %162 : vector<8x128xf32>
    %164 = vector.extract_strided_slice %0 {offsets = [0, 128], sizes = [8, 8], strides = [1, 1]} : vector<8x168xf32> to vector<8x8xf32>
    %c1_i32_60 = arith.constant 1 : i32
    %165 = tpu.dynamic_rotate %158 by %c1_i32_60 dim 1 : vector<8x128xf32>, i32 -> vector<8x128xf32>
    %166 = vector.broadcast %28 : vector<1x128xf32> to vector<8x128xf32>
    %167 = arith.mulf %165, %166 : vector<8x128xf32>
    %cst_61 = arith.constant dense<0.000000e+00> : vector<8x128xf32>
    %168 = tpu.matmul %164, %167, %cst_61 {dimension_numbers = #tpu.dot_dimension_numbers<[1], [0], [0], [1], [0, 0, 1, 1], [], []>} : vector<8x8xf32>, vector<8x128xf32>, vector<8x128xf32> -> vector<8x128xf32>
    %169 = arith.addf %163, %168 : vector<8x128xf32>
    %170 = vector.extract_strided_slice %0 {offsets = [0, 144], sizes = [8, 8], strides = [1, 1]} : vector<8x168xf32> to vector<8x8xf32>
    %c127_i32_62 = arith.constant 127 : i32
    %171 = tpu.dynamic_rotate %158 by %c127_i32_62 dim 1 : vector<8x128xf32>, i32 -> vector<8x128xf32>
    %172 = vector.broadcast %39 : vector<1x128xf32> to vector<8x128xf32>
    %173 = arith.mulf %171, %172 : vector<8x128xf32>
    %cst_63 = arith.constant dense<0.000000e+00> : vector<8x128xf32>
    %174 = tpu.matmul %170, %173, %cst_63 {dimension_numbers = #tpu.dot_dimension_numbers<[1], [0], [0], [1], [0, 0, 1, 1], [], []>} : vector<8x8xf32>, vector<8x128xf32>, vector<8x128xf32> -> vector<8x128xf32>
    %175 = arith.addf %169, %174 : vector<8x128xf32>
    %176 = vector.extract_strided_slice %0 {offsets = [0, 152], sizes = [8, 8], strides = [1, 1]} : vector<8x168xf32> to vector<8x8xf32>
    %cst_64 = arith.constant dense<0.000000e+00> : vector<8x128xf32>
    %177 = tpu.matmul %176, %131, %cst_64 {dimension_numbers = #tpu.dot_dimension_numbers<[1], [0], [0], [1], [0, 0, 1, 1], [], []>} : vector<8x8xf32>, vector<8x128xf32>, vector<8x128xf32> -> vector<8x128xf32>
    %178 = vector.extract_strided_slice %0 {offsets = [0, 167], sizes = [8, 1], strides = [1, 1]} : vector<8x168xf32> to vector<8x1xf32>
    %179 = vector.broadcast %178 : vector<8x1xf32> to vector<8x128xf32>
    %180 = arith.addf %177, %179 : vector<8x128xf32>
    %181 = arith.addf %180, %175 : vector<8x128xf32>
    %cst_65 = arith.constant 0.000000e+00 : f32
    %182 = vector.broadcast %cst_65 : f32 to vector<8x128xf32>
    %183 = arith.maximumf %181, %182 : vector<8x128xf32>
    %184 = vector.extract_strided_slice %183 {offsets = [0, 0], sizes = [4, 16], strides = [1, 1]} : vector<8x128xf32> to vector<4x16xf32>
    %c0_66 = arith.constant 0 : index
    %c0_67 = arith.constant 0 : index
    %c0_68 = arith.constant 0 : index
    %185 = vector.load %arg3[%c0_66, %c0_67, %c0_68] : memref<2x4x16xf32, #tpu.memory_space<vmem>>, vector<1x4x16xf32>
    %186 = vector.shape_cast %185 : vector<1x4x16xf32> to vector<4x16xf32>
    %187 = vector.shape_cast %184 : vector<4x16xf32> to vector<1x4x16xf32>
    tpu.vector_store %arg3[%c0_66, %c0_67, %c0_68], %187 {strides = array<i32>} : memref<2x4x16xf32, #tpu.memory_space<vmem>>, vector<1x4x16xf32>,
    %188 = vector.extract_strided_slice %183 {offsets = [0, 16], sizes = [4, 16], strides = [1, 1]} : vector<8x128xf32> to vector<4x16xf32>
    %c1_69 = arith.constant 1 : index
    %c0_70 = arith.constant 0 : index
    %c0_71 = arith.constant 0 : index
    %189 = vector.load %arg3[%c1_69, %c0_70, %c0_71] : memref<2x4x16xf32, #tpu.memory_space<vmem>>, vector<1x4x16xf32>
    %190 = vector.shape_cast %189 : vector<1x4x16xf32> to vector<4x16xf32>
    %191 = vector.shape_cast %188 : vector<4x16xf32> to vector<1x4x16xf32>
    tpu.vector_store %arg3[%c1_69, %c0_70, %c0_71], %191 {strides = array<i32>} : memref<2x4x16xf32, #tpu.memory_space<vmem>>, vector<1x4x16xf32>,
    return
  }
}

</mosaic_0001>

<bundles_post_ra>
// kernel: _rescnn_forward.1
= control target key start
LH: loop header
LB: loop body
LE: loop exit
PB: predicated region body
PF: predicated region fallthrough
CT: control target
= control target key end

     0   :  { %9 = vsyncpa [#allocation4], 0  ;;  %s2308_s0 = inlined_call_operand.hbm [shape: f32[2,4,16], index: 0, kind: input, shape index: {}]   ;;  %s2309_s1 = inlined_call_operand.hbm [shape: f32[8,168], index: 1, kind: input, shape index: {}]   ;;  %s2310_s2 = inlined_call_operand.hbm [shape: f32[2,8,16], index: 2, kind: output, shape index: {0}]   ;;  %s2311_s3 = inlined_call_operand.hbm [shape: f32[2,4,16], index: 3, kind: output, shape index: {1}]  }
   0x1   :  { %10 = vsyncpa [#allocation7], 0 }
   0x2   :  { %11 = vsyncpa [#allocation5], 0 }
   0x3   :  { %12 = vsyncpa [#allocation10], 0  ;;  %s2028_s12 = smov [#allocation3]   ;;  %s1932_s16 = scalar_lea.hbm %s2308_s0, 128 }
   0x4   :  { %s18_s13 = sshll.u32 %s2028_s12, 4  ;;  %p1933_p0 = scmp.ne.s32.totalorder %s2308_s0, %s1932_s16  ;;  %s19_s13 = int_to_ptr.vmem [resolvable:$true] %s18_s13 }
   0x5   :  { %p1936_p1 = scmp.lt.u32.totalorder %s1932_s16, %s2308_s0 }
   0x7   :  { %p1938_p2 = pnand %p1936_p1, %p1933_p0 }
   0x9   :  { %1941 = shalt.err (!%p1938_p2)
}
   0xa   :  { %s1942_s21 = scalar_lea.vmem %s19_s13, 128  ;;  %p1947_p4 = scmp.lt.s32.totalorder %s19_s13, %s19_s13 }
   0xb   :  { %p1943_p3 = scmp.ne.s32.totalorder %s19_s13, %s1942_s21  ;;  %p1948_p5 = scmp.lt.s32.totalorder %s1942_s21, %s1942_s21 }
   0xd   :  { %p1949_p6 = por %p1948_p5, %p1947_p4 }
   0xf   :  { %p1950_p7 = pnand %p1949_p6, %p1943_p3 }
  0x11   :  { %1953 = shalt.err (!%p1950_p7)
}
  0x12   :  { %s2029_s22 = smov 64   ;;  %s2030_s23 = smov 4  }
  0x13   :  { %24 = dma.hbm_to_vmem [thread:$0]  %s2308_s0, 128, %s19_s13, [#allocation4], %s2029_s22, %s2029_s22, %s2030_s23  }
  0x14   :  { %s2031_s26 = smov [#allocation6]   ;;  %s1954_s30 = scalar_lea.hbm %s2309_s1, 256 }
  0x15   :  { %s31_s27 = sshll.u32 %s2031_s26, 4  ;;  %p1955_p8 = scmp.ne.s32.totalorder %s2309_s1, %s1954_s30  ;;  %s32_s27 = int_to_ptr.vmem [resolvable:$true] %s31_s27 }
  0x16   :  { %p1958_p9 = scmp.lt.u32.totalorder %s1954_s30, %s2309_s1 }
  0x18   :  { %p1960_p10 = pnand %p1958_p9, %p1955_p8 }
  0x1a   :  { %1963 = shalt.err (!%p1960_p10)
}
  0x1b   :  { %s1964_s8 = scalar_lea.vmem %s32_s27, 256  ;;  %p1969_p12 = scmp.lt.s32.totalorder %s32_s27, %s32_s27 }
  0x1c   :  { %p1965_p11 = scmp.ne.s32.totalorder %s32_s27, %s1964_s8  ;;  %p1970_p13 = scmp.lt.s32.totalorder %s1964_s8, %s1964_s8 }
  0x1e   :  { %p1971_p0 = por %p1970_p13, %p1969_p12 }
  0x20   :  { %p1972_p1 = pnand %p1971_p0, %p1965_p11 }
  0x22   :  { %1975 = shalt.err (!%p1972_p1)
}
  0x23   :  { %34 = dma.hbm_to_vmem [thread:$0]  %s2309_s1, 256, %s32_s27, [#allocation7]  }
  0x24   :  { %2020 = dma.done.wait [#allocation4], 128  }
  0x25   :  { %2021 = vsyncadd [#allocation4], 4294967168 }
  0x26   :  { %2022 = dma.done.wait [#allocation7], 256  }
  0x27   :  { %2023 = vsyncadd [#allocation7], 4294967040  ;;  %v2032_v0 = vmov 0.0   ;;  %vm71_vm0 = vcmask 125952   ;;  %v74_v1 = vld [vmem:[#allocation3 + $0x4] sm:$0xf]  ;;  %v43_v8 = vlaneseq }
  0x28   :  { %69 = vst [vmem:[#allocation2] sm:$0xff] %v2032_v0  ;;  %1761 = vmatprep.subr.mxu1 %v2032_v0  ;;  %1766 = vmatprep.subr.mxu0 %v2032_v0  ;;  %v70_v2 = vld [vmem:[#allocation3] sm:$0xf]  ;;  %s2033_s10 = smov 16   ;;  %vm79_vm1 = vcmask 257152   ;;  %vm2034_vm2 = vmmov 0  }
  0x29   :  { %76 = vrot.lane.b32.xlu0 %v74_v1, %s2033_s10  ;;  %72 = vst.msk [vmem:[#allocation2] sm:$0xf] %vm71_vm0, %v70_v2  ;;  %1768 = vmatprep.mubr.msk.f32.mxu0 %vm2034_vm2, %v2032_v0  ;;  %v2035_v5 = vmov 32   ;;  %s2036_s1 = smov 127   ;;  %s2037_s11 = smov 1   ;;  %v2124_v6 = vld [vmem:[#allocation6] sm:$0xff] }
  0x2a   :  { %1763 = vmatprep.mubr.msk.f32.mxu1 %vm2034_vm2, %v2032_v0  ;;  %1924 = vset.pattern.permute.xlu1 %v2035_v5  ;;  %s2038_s12 = smov 120   ;;  %s2039_s13 = smov 112   ;;  %v2131_v7 = vld [vmem:[#allocation6 + $0x8] sm:$0xff]  ;;  %v44_v9 = vand.u32 127, %v43_v8  ;;  %vm90_vm5 = vcmask 64512   ;;  %v2043_v30 = vmov 33  }
  0x2b   :  { %s2040_s14 = smov 96   ;;  %s2041_s15 = smov 104   ;;  %1925 = vset.pattern.permute.xlu0 %v2043_v30  ;;  %v2044_v31 = vmov 34   ;;  %v2048_v47 = vmov 35   ;;  %v2050_v54 = vmov 36   ;;  %vm1103_vm6 = vcmask 130048  }
  0x2c   :  { %v49_v10 = vand.u32 15, %v44_v9  ;;  %s2042_s16 = smov 88   ;;  %s2045_s17 = smov 80  }
  0x2d   :  { %s2046_s18 = smov 72   ;;  %s2047_s19 = smov 56  }
  0x2e   :  { %v57_v11 = vadd.s32 4294967295, %v49_v10  ;;  %v63_v12 = vadd.s32 1, %v49_v10  ;;  %s2049_s20 = smov 40   ;;  %s2051_s21 = smov 48  }
  0x2f   :  { %s2052_s24 = smov 32   ;;  %s2053_s25 = smov 24  }
  0x30   :  { %vm58_vm3 = vcmp.ge.s32.totalorder %v57_v11, 0  ;;  %vm65_vm4 = vcmp.lt.s32.totalorder %v63_v12, 16  ;;  %s2054_s26 = smov 8   ;;  %s2058_s27 = smov [#allocation8]  }
  0x31   :  { %v2135_v13 = vsel %vm58_vm3, 1.0, %v2032_v0  ;;  %v2138_v14 = vsel %vm65_vm4, 1.0, %v2032_v0  ;;  %s1670_s28 = sshll.u32 %s2058_s27, 4  ;;  %s1671_s28 = int_to_ptr.vmem [resolvable:$true] %s1670_s28 }
  0x32   :  { %s1976_s29 = scalar_lea.vmem %s1671_s28, 256  ;;  %p1981_p3 = scmp.lt.s32.totalorder %s1671_s28, %s1671_s28 }
  0x33   :  { %p1977_p2 = scmp.ne.s32.totalorder %s1671_s28, %s1976_s29  ;;  %p1982_p4 = scmp.lt.s32.totalorder %s1976_s29, %s1976_s29 }
  0x35   :  { %p1983_p5 = por %p1982_p4, %p1981_p3 }
  0x37   :  { %p1984_p6 = pnand %p1983_p5, %p1977_p2 }
  0x9b   :  { %v77_v3 = vpop.permute.xlu0 %76 }
  0x9c   :  { %80 = vst.msk [vmem:[#allocation2] sm:$0xf] %vm79_vm1, %v77_v3 }
  0xa3   :  { %v2117_v4 = vld [vmem:[#allocation2] sm:$0xff] }
  0xa4   :  { %239 = vrot.lane.b32.xlu1 %v2117_v4, %s2036_s1  ;;  %163 = vrot.lane.b32.xlu0 %v2117_v4, %s2037_s11 }
  0xa5   :  { %1762 = vmatpush3.msra.mxu1 %v2117_v4 }
  0xa6   :  { %1776 = vmatprep.subr.mxu1 %v2032_v0 }
  0xa8   :  { %88 = vrot.lane.b32.xlu1 %v2124_v6, %s2038_s12  ;;  %242 = vrot.lane.b32.xlu0 %v2124_v6, %s2039_s13 }
  0xac   :  { %84 = vperm.xlu1 %1924, %v2131_v7   ;;  %322 = vrot.lane.b32.xlu0 %v2124_v6, %s2040_s14 }
  0xb0   :  { %399 = vrot.lane.b32.xlu0 %v2124_v6, %s2041_s15  ;;  %1926 = vset.pattern.permute.xlu1 %v2044_v31 }
  0xb4   :  { %477 = vrot.lane.b32.xlu0 %v2124_v6, %s2042_s16 }
  0xb8   :  { %319 = vperm.xlu0 %1925, %v2131_v7  }
  0xbc   :  { %1927 = vset.pattern.permute.xlu0 %v2048_v47 }
 0x116   :  { %v240_v15 = vpop.permute.xlu1 %239  ;;  %v164_v16 = vpop.permute.xlu0 %163 }
 0x117   :  { %v165_v17 = vmul.f32 %v2135_v13, %v164_v16  ;;  %v241_v18 = vmul.f32 %v2138_v14, %v240_v15 }
 0x119   :  { %1767 = vmatpush3.msra.mxu0 %v165_v17 }
 0x11a   :  { %1769 = vmatmul.mubr.msk.f32.vlgmr.msra.gmra.mrb[0].mxu0 %vm90_vm5, %v2124_v6  ;;  %1771 = vmatprep.subr.mxu0 %v2032_v0  ;;  %v89_v19 = vpop.permute.xlu1 %88  ;;  %v243_v20 = vpop.permute.xlu0 %242 }
 0x11b   :  { %1772 = vmatpush3.msra.mxu0 %v241_v18  ;;  %1764 = vmatmul.mubr.msk.f32.vlgmr.msra.gmra.mrb[0].mxu1 %vm90_vm5, %v89_v19 }
 0x11c   :  { %1773 = vmatprep.mubr.msk.f32.mxu0 %vm2034_vm2, %v2032_v0  ;;  %1778 = vmatprep.mubr.msk.f32.mxu1 %vm2034_vm2, %v2032_v0 }
 0x11d   :  { %1796 = vmatprep.subr.mxu0 %v2032_v0 }
 0x11e   :  { %v323_v29 = vpop.permute.xlu0 %322 }
 0x122   :  { %1774 = vmatmul.mubr.msk.f32.vlgmr.msra.gmra.mrb[0].mxu0 %vm90_vm5, %v243_v20  ;;  %v400_v34 = vpop.permute.xlu0 %399 }
 0x123   :  { %1798 = vmatprep.mubr.msk.f32.mxu0 %vm2034_vm2, %v2032_v0 }
 0x126   :  { %v478_v37 = vpop.permute.xlu0 %477 }
 0x12b   :  { %v85_v23 = vpop.permute.xlu1 %84 }
 0x137   :  { %v320_v39 = vpop.permute.xlu0 %319 }
 0x1ee   :  { %v159_v21 = vpop.f32.mrb[0].mxu1 }
 0x1ef   :  { %v1765_v22 = vpop.f32.mrb[1].mxu1  ;;  %v160_v24 = vadd.f32 %v159_v21, %v85_v23  ;;  %v2055_v21 = vmov 37  }
 0x1f5   :  { %v312_v25 = vpop.f32.mrb[0].mxu0 }
 0x1f6   :  { %v1862_v26 = vadd.f32 %v312_v25, %v160_v24  ;;  %v1775_v27 = vpop.f32.mrb[1].mxu0 }
 0x1f7   :  { %v2056_v27 = vmov 38  }
 0x1f8   :  { %v317_v28 = vmax.f32 %v1862_v26, 0.0 }
 0x1fa   :  { %396 = vrot.lane.b32.xlu1 %v317_v28, %s2037_s11  ;;  %1777 = vmatpush3.msra.mxu1 %v317_v28 }
 0x1fb   :  { %1779 = vmatmul.mubr.msk.f32.vlgmr.msra.gmra.mrb[2].mxu1 %vm90_vm5, %v323_v29  ;;  %1781 = vmatprep.subr.mxu1 %v2032_v0 }
 0x1fc   :  { %1783 = vmatprep.mubr.msk.f32.mxu1 %vm2034_vm2, %v2032_v0 }
 0x1fe   :  { %474 = vrot.lane.b32.xlu1 %v317_v28, %s2036_s1 }
 0x202   :  { %556 = vrot.lane.b32.xlu1 %v2124_v6, %s2045_s17 }
 0x206   :  { %553 = vperm.xlu1 %1926, %v2131_v7  }
 0x20a   :  { %636 = vrot.lane.b32.xlu1 %v2124_v6, %s2029_s22 }
 0x20b   :  { %1928 = vset.pattern.permute.xlu1 %v2050_v54 }
 0x20e   :  { %713 = vrot.lane.b32.xlu1 %v2124_v6, %s2046_s18 }
 0x212   :  { %791 = vrot.lane.b32.xlu1 %v2124_v6, %s2047_s19 }
 0x216   :  { %871 = vrot.lane.b32.xlu1 %v2124_v6, %s2049_s20 }
 0x26c   :  { %v397_v32 = vpop.permute.xlu1 %396 }
 0x26d   :  { %v398_v33 = vmul.f32 %v2135_v13, %v397_v32 }
 0x26f   :  { %1782 = vmatpush3.msra.mxu1 %v398_v33 }
 0x270   :  { %v475_v35 = vpop.permute.xlu1 %474  ;;  %1784 = vmatmul.mubr.msk.f32.vlgmr.msra.gmra.mrb[2].mxu1 %vm90_vm5, %v400_v34  ;;  %1786 = vmatprep.subr.mxu1 %v2032_v0  ;;  %v2057_v34 = vmov 39  }
 0x271   :  { %v476_v36 = vmul.f32 %v2138_v14, %v475_v35  ;;  %1788 = vmatprep.mubr.msk.f32.mxu1 %vm2034_vm2, %v2032_v0 }
 0x273   :  { %1787 = vmatpush3.msra.mxu1 %v476_v36 }
 0x274   :  { %1791 = vmatprep.subr.mxu1 %v2032_v0  ;;  %v557_v38 = vpop.permute.xlu1 %556 }
 0x278   :  { %1789 = vmatmul.mubr.msk.f32.vlgmr.msra.gmra.mrb[2].mxu1 %vm90_vm5, %v478_v37 }
 0x279   :  { %1792 = vmatpush3.msra.mxu1 %v2117_v4  ;;  %1793 = vmatprep.mubr.msk.f32.mxu1 %vm2034_vm2, %v2032_v0 }
 0x27a   :  { %1811 = vmatprep.subr.mxu1 %v2032_v0 }
 0x280   :  { %1794 = vmatmul.mubr.msk.f32.vlgmr.msra.gmra.mrb[2].mxu1 %vm90_vm5, %v557_v38 }
 0x281   :  { %1813 = vmatprep.mubr.msk.f32.mxu1 %vm2034_vm2, %v2032_v0 }
 0x285   :  { %v554_v40 = vpop.permute.xlu1 %553 }
 0x286   :  { %v1863_v41 = vadd.f32 %v554_v40, %v320_v39 }
 0x289   :  { %v637_v46 = vpop.permute.xlu1 %636 }
 0x28d   :  { %v714_v50 = vpop.permute.xlu1 %713 }
 0x291   :  { %v792_v53 = vpop.permute.xlu1 %791 }
 0x295   :  { %v872_v60 = vpop.permute.xlu1 %871 }
 0x353   :  { %v626_v42 = vpop.f32.mrb[2].mxu1 }
 0x354   :  { %v1864_v43 = vadd.f32 %v1863_v41, %v626_v42  ;;  %v1795_v44 = vpop.f32.mrb[3].mxu1 }
 0x356   :  { %v2186_v45 = vmax.f32 %v1864_v43, 0.0 }
 0x358   :  { %710 = vrot.lane.b32.xlu0 %v2186_v45, %s2037_s11  ;;  %1797 = vmatpush3.msra.mxu0 %v2186_v45 }
 0x359   :  { %1799 = vmatmul.mubr.msk.f32.vlgmr.msra.gmra.mrb[2].mxu0 %vm90_vm5, %v637_v46  ;;  %1801 = vmatprep.subr.mxu0 %v2032_v0 }
 0x35a   :  { %1803 = vmatprep.mubr.msk.f32.mxu0 %vm2034_vm2, %v2032_v0 }
 0x35c   :  { %788 = vrot.lane.b32.xlu0 %v2186_v45, %s2036_s1 }
 0x360   :  { %633 = vperm.xlu0 %1927, %v2131_v7  }
 0x364   :  { %1931 = vset.pattern.permute.xlu0 %v2057_v34 }
 0x3ca   :  { %v711_v48 = vpop.permute.xlu0 %710 }
 0x3cb   :  { %v712_v49 = vmul.f32 %v2135_v13, %v711_v48 }
 0x3cd   :  { %1802 = vmatpush3.msra.mxu0 %v712_v49 }
 0x3ce   :  { %v789_v51 = vpop.permute.xlu0 %788  ;;  %1804 = vmatmul.mubr.msk.f32.vlgmr.msra.gmra.mrb[2].mxu0 %vm90_vm5, %v714_v50  ;;  %1806 = vmatprep.subr.mxu0 %v2032_v0 }
 0x3cf   :  { %v790_v52 = vmul.f32 %v2138_v14, %v789_v51  ;;  %1808 = vmatprep.mubr.msk.f32.mxu0 %vm2034_vm2, %v2032_v0 }
 0x3d1   :  { %1807 = vmatpush3.msra.mxu0 %v790_v52 }
 0x3d2   :  { %1821 = vmatprep.subr.mxu0 %v2032_v0 }
 0x3d6   :  { %1809 = vmatmul.mubr.msk.f32.vlgmr.msra.gmra.mrb[2].mxu0 %vm90_vm5, %v792_v53 }
 0x3d7   :  { %1823 = vmatprep.mubr.msk.f32.mxu0 %vm2034_vm2, %v2032_v0 }
 0x3df   :  { %v634_v55 = vpop.permute.xlu0 %633 }
 0x4a9   :  { %v861_v56 = vpop.f32.mrb[2].mxu0 }
 0x4aa   :  { %v1865_v57 = vadd.f32 %v861_v56, %v634_v55  ;;  %v1810_v58 = vpop.f32.mrb[3].mxu0 }
 0x4ac   :  { %v866_v59 = vmax.f32 %v1865_v57, 0.0 }
 0x4ae   :  { %1023 = vrot.lane.b32.xlu0 %v866_v59, %s2036_s1  ;;  %945 = vrot.lane.b32.xlu1 %v866_v59, %s2037_s11 }
 0x4af   :  { %1812 = vmatpush3.msra.mxu1 %v866_v59 }
 0x4b0   :  { %1814 = vmatmul.mubr.msk.f32.vlgmr.msra.gmra.mrb[4].mxu1 %vm90_vm5, %v872_v60  ;;  %1816 = vmatprep.subr.mxu1 %v2032_v0 }
 0x4b1   :  { %1818 = vmatprep.mubr.msk.f32.mxu1 %vm2034_vm2, %v2032_v0 }
 0x4b2   :  { %948 = vrot.lane.b32.xlu1 %v2124_v6, %s2051_s21  ;;  %1026 = vrot.lane.b32.xlu0 %v2124_v6, %s2052_s24 }
 0x4b6   :  { %868 = vperm.xlu1 %1928, %v2131_v7   ;;  %1115 = vrot.lane.b32.xlu0 %v2124_v6, %s2033_s10 }
 0x4ba   :  { %1192 = vrot.lane.b32.xlu0 %v2124_v6, %s2053_s25  ;;  %1929 = vset.pattern.permute.xlu1 %v2055_v21 }
 0x4be   :  { %1270 = vrot.lane.b32.xlu0 %v2124_v6, %s2054_s26 }
 0x4c2   :  { %1350 = vrot.lane.b32.xlu0 %v2131_v7, %s2038_s12 }
 0x520   :  { %v1024_v61 = vpop.permute.xlu0 %1023  ;;  %v946_v62 = vpop.permute.xlu1 %945 }
 0x521   :  { %v1025_v63 = vmul.f32 %v2138_v14, %v1024_v61  ;;  %v947_v1 = vmul.f32 %v2135_v13, %v946_v62 }
 0x523   :  { %1817 = vmatpush3.msra.mxu1 %v947_v1  ;;  %1822 = vmatpush3.msra.mxu0 %v1025_v63 }
 0x524   :  { %v949_v2 = vpop.permute.xlu1 %948  ;;  %v1027_v3 = vpop.permute.xlu0 %1026  ;;  %1826 = vmatprep.subr.mxu1 %v2032_v0  ;;  %1841 = vmatprep.subr.mxu0 %v2032_v0 }
 0x525   :  { %1819 = vmatmul.mubr.msk.f32.vlgmr.msra.gmra.mrb[6].mxu1 %vm90_vm5, %v949_v2  ;;  %1824 = vmatmul.mubr.msk.f32.vlgmr.msra.gmra.mrb[4].mxu0 %vm90_vm5, %v1027_v3 }
 0x526   :  { %1828 = vmatprep.mubr.msk.f32.mxu1 %vm2034_vm2, %v2032_v0  ;;  %1843 = vmatprep.mubr.msk.f32.mxu0 %vm2034_vm2, %v2032_v0 }
 0x528   :  { %v1116_v20 = vpop.permute.xlu0 %1115 }
 0x52c   :  { %v1193_v23 = vpop.permute.xlu0 %1192 }
 0x530   :  { %v1271_v26 = vpop.permute.xlu0 %1270 }
 0x534   :  { %v1351_v33 = vpop.permute.xlu0 %1350 }
 0x535   :  { %v869_v8 = vpop.permute.xlu1 %868 }
 0x583   :  { %v941_v4 = vpop.f32.mrb[4].mxu1 }
 0x584   :  { %v1815_v5 = vpop.f32.mrb[5].mxu1  ;;  %v942_v9 = vadd.f32 %v941_v4, %v869_v8 }
 0x5f8   :  { %v1018_v10 = vpop.f32.mrb[6].mxu1  ;;  %v1096_v11 = vpop.f32.mrb[4].mxu0 }
 0x5f9   :  { %v1022_v12 = vadd.f32 %v1018_v10, %v942_v9  ;;  %v1820_v15 = vpop.f32.mrb[7].mxu1  ;;  %v1825_v16 = vpop.f32.mrb[5].mxu0 }
 0x5fb   :  { %v1100_v17 = vadd.f32 %v1096_v11, %v1022_v12 }
 0x5fd   :  { %v1101_v18 = vadd.f32 %v1100_v17, %v2186_v45 }
 0x5ff   :  { %v1102_v19 = vmax.f32 %v1101_v18, 0.0 }
 0x601   :  { %1189 = vrot.lane.b32.xlu1 %v1102_v19, %s2037_s11  ;;  %1827 = vmatpush3.msra.mxu1 %v1102_v19  ;;  %1104 = vst.msk [vmem:[#allocation8] sm:$0xff] %vm1103_vm6, %v1102_v19 }
 0x602   :  { %1829 = vmatmul.mubr.msk.f32.vlgmr.msra.gmra.mrb[8].mxu1 %vm90_vm5, %v1116_v20  ;;  %1831 = vmatprep.subr.mxu1 %v2032_v0 }
 0x603   :  { %1833 = vmatprep.mubr.msk.f32.mxu1 %vm2034_vm2, %v2032_v0 }
 0x605   :  { %1267 = vrot.lane.b32.xlu1 %v1102_v19, %s2036_s1 }
 0x609   :  { %1112 = vperm.xlu1 %1929, %v2131_v7  }
 0x60d   :  { %1930 = vset.pattern.permute.xlu1 %v2056_v27 }
 0x673   :  { %v1190_v6 = vpop.permute.xlu1 %1189 }
 0x674   :  { %v1191_v22 = vmul.f32 %v2135_v13, %v1190_v6 }
 0x676   :  { %1832 = vmatpush3.msra.mxu1 %v1191_v22 }
 0x677   :  { %v1268_v24 = vpop.permute.xlu1 %1267  ;;  %1834 = vmatmul.mubr.msk.f32.vlgmr.msra.gmra.mrb[8].mxu1 %vm90_vm5, %v1193_v23  ;;  %1836 = vmatprep.subr.mxu1 %v2032_v0 }
 0x678   :  { %v1269_v25 = vmul.f32 %v2138_v14, %v1268_v24  ;;  %1838 = vmatprep.mubr.msk.f32.mxu1 %vm2034_vm2, %v2032_v0 }
 0x67a   :  { %1837 = vmatpush3.msra.mxu1 %v1269_v25 }
 0x67f   :  { %1839 = vmatmul.mubr.msk.f32.vlgmr.msra.gmra.mrb[8].mxu1 %vm90_vm5, %v1271_v26 }
 0x688   :  { %v1113_v28 = vpop.permute.xlu1 %1112 }
 0x752   :  { %v1340_v29 = vpop.f32.mrb[8].mxu1 }
 0x753   :  { %v1866_v30 = vadd.f32 %v1340_v29, %v1113_v28  ;;  %v1840_v31 = vpop.f32.mrb[9].mxu1 }
 0x755   :  { %v1345_v32 = vmax.f32 %v1866_v30, 0.0 }
 0x757   :  { %1500 = vrot.lane.b32.xlu0 %v1345_v32, %s2036_s1  ;;  %1424 = vrot.lane.b32.xlu1 %v1345_v32, %s2037_s11 }
 0x758   :  { %1842 = vmatpush3.msra.mxu0 %v1345_v32 }
 0x759   :  { %1844 = vmatmul.mubr.msk.f32.vlgmr.msra.gmra.mrb[6].mxu0 %vm90_vm5, %v1351_v33  ;;  %1846 = vmatprep.subr.mxu0 %v2032_v0 }
 0x75a   :  { %1848 = vmatprep.mubr.msk.f32.mxu0 %vm2034_vm2, %v2032_v0 }
 0x75b   :  { %1503 = vrot.lane.b32.xlu1 %v2131_v7, %s2039_s13  ;;  %1582 = vrot.lane.b32.xlu0 %v2131_v7, %s2041_s15 }
 0x75f   :  { %1347 = vperm.xlu1 %1930, %v2131_v7   ;;  %1579 = vperm.xlu0 %1931, %v2131_v7  }
 0x763   :  { %1106 = vrot.lane.b32.xlu1 %v1102_v19, %s2039_s13 }
 0x7c9   :  { %v1501_v35 = vpop.permute.xlu0 %1500  ;;  %v1425_v36 = vpop.permute.xlu1 %1424 }
 0x7ca   :  { %v1426_v37 = vmul.f32 %v2135_v13, %v1425_v36  ;;  %v1502_v38 = vmul.f32 %v2138_v14, %v1501_v35 }
 0x7cc   :  { %1847 = vmatpush3.msra.mxu0 %v1426_v37 }
 0x7cd   :  { %1849 = vmatmul.mubr.msk.f32.vlgmr.msra.gmra.mrb[6].mxu0 %vm90_vm5, %v2131_v7  ;;  %1851 = vmatprep.subr.mxu0 %v2032_v0  ;;  %v1504_v39 = vpop.permute.xlu1 %1503  ;;  %v1583_v13 = vpop.permute.xlu0 %1582 }
 0x7ce   :  { %1852 = vmatpush3.msra.mxu0 %v1502_v38  ;;  %1853 = vmatprep.mubr.msk.f32.mxu0 %vm2034_vm2, %v2032_v0 }
 0x7cf   :  { %1856 = vmatprep.subr.mxu0 %v2032_v0 }
 0x7d5   :  { %1854 = vmatmul.mubr.msk.f32.vlgmr.msra.gmra.mrb[6].mxu0 %vm90_vm5, %v1504_v39 }
 0x7d6   :  { %1857 = vmatpush3.msra.mxu0 %v1102_v19  ;;  %1858 = vmatprep.mubr.msk.f32.mxu0 %vm2034_vm2, %v2032_v0 }
 0x7dd   :  { %1859 = vmatmul.mubr.msk.f32.vlgmr.msra.gmra.mrb[6].mxu0 %vm90_vm5, %v1583_v13 }
 0x7de   :  { %v1348_v14 = vpop.permute.xlu1 %1347  ;;  %v1580_v40 = vpop.permute.xlu0 %1579 }
 0x7e2   :  { %v1107_v7 = vpop.permute.xlu1 %1106 }
 0x7e3   :  { %1110 = vst.msk [vmem:[#allocation8 + $0x8] sm:$0xff] %vm1103_vm6, %v1107_v7 }
 0x7e4   :  { %1987 = shalt.err (!%p1984_p6)
}
 0x7e5   :  { %s1988_s5 = scalar_lea.hbm %s2310_s2, 256 }
 0x7e6   :  { %p1989_p7 = scmp.ne.s32.totalorder %s2310_s2, %s1988_s5  ;;  %p1992_p8 = scmp.lt.u32.totalorder %s1988_s5, %s2310_s2 }
 0x7e8   :  { %p1994_p9 = pnand %p1992_p8, %p1989_p7 }
 0x7ea   :  { %1997 = shalt.err (!%p1994_p9)
}
 0x7eb   :  { %s2059_s9 = smov 128   ;;  %v1867_v0 = vadd.f32 %v1580_v40, %v1348_v14  ;;  %s2060_s11 = smov [#allocation9]  }
 0x7ec   :  { %1676 = dma.vmem_to_hbm [thread:$0]  %s1671_s28, 256, %s2310_s2, [#allocation5], %s2059_s9, %s2059_s9, %s2054_s26  }
 0x7ed   :  { %s1682_s12 = sshll.u32 %s2060_s11, 4  ;;  %s1683_s12 = int_to_ptr.vmem [resolvable:$true] %s1682_s12 }
 0x7ee   :  { %s1998_s14 = scalar_lea.vmem %s1683_s12, 128  ;;  %p2003_p11 = scmp.lt.s32.totalorder %s1683_s12, %s1683_s12 }
 0x7ef   :  { %p1999_p10 = scmp.ne.s32.totalorder %s1683_s12, %s1998_s14  ;;  %p2004_p12 = scmp.lt.s32.totalorder %s1998_s14, %s1998_s14 }
 0x7f1   :  { %p2005_p13 = por %p2004_p12, %p2003_p11 }
 0x7f3   :  { %p2006_p0 = pnand %p2005_p13, %p1999_p10 }
 0x8b0   :  { %v1652_v41 = vpop.f32.mrb[6].mxu0 }
 0x8b1   :  { %v1868_v42 = vadd.f32 %v1867_v0, %v1652_v41  ;;  %v1860_v43 = vpop.f32.mrb[7].mxu0 }
 0x8b3   :  { %v1657_v44 = vmax.f32 %v1868_v42, 0.0 }
 0x8b5   :  { %1658 = vst.msk [vmem:[#allocation9] sm:$0xf] %vm71_vm0, %v1657_v44  ;;  %1660 = vrot.lane.b32.xlu1 %v1657_v44, %s2039_s13 }
 0x927   :  { %v1661_v45 = vpop.permute.xlu1 %1660 }
 0x928   :  { %1664 = vst.msk [vmem:[#allocation9 + $0x4] sm:$0xf] %vm71_vm0, %v1661_v45 }
 0x929   :  { %2009 = shalt.err (!%p2006_p0)
}
 0x92a   :  { %s2010_s16 = scalar_lea.hbm %s2311_s3, 128 }
 0x92b   :  { %p2011_p1 = scmp.ne.s32.totalorder %s2311_s3, %s2010_s16  ;;  %p2014_p2 = scmp.lt.u32.totalorder %s2010_s16, %s2311_s3 }
 0x92d   :  { %p2016_p3 = pnand %p2014_p2, %p2011_p1 }
 0x92f   :  { %2019 = shalt.err (!%p2016_p3)
}
 0x930   :  { %1688 = dma.vmem_to_hbm [thread:$0]  %s1683_s12, 128, %s2311_s3, [#allocation10], %s2029_s22, %s2029_s22, %s2030_s23  }
 0x931   :  { %2024 = dma.done.wait [#allocation5], 256  }
 0x932   :  { %2025 = vsyncadd [#allocation5], 4294967040 }
 0x933   :  { %2026 = dma.done.wait [#allocation10], 128  }
 0x934   :  { %2027 = vsyncadd [#allocation10], 4294967168 }
 0x935   :  { %1695 = vsyncpa [#allocation4], 1 }
 0x936   :  { %1696 = vsyncpa [#allocation7], 1 }
 0x937   :  { %1697 = vsyncpa [#allocation5], 1 }
 0x938   :  { %1698 = vsyncpa [#allocation10], 1 }

</bundles_post_ra>
